<compile_context>
chip_gen: v5e
topology: v5e:2x2
jax: 0.10.0
libtpu: 0.0.40
codegen_flags: <defaults>
</compile_context>

<pallas_src>
import functools

import jax
import jax.numpy as jnp
import numpy as np
from jax import lax
from jax.experimental import pallas as pl
from jax.experimental.pallas import tpu as pltpu


def _round_up(x, m):
    return ((x + m - 1) // m) * m


def _simple_precomp_kernel(x_ref, w_ref, b_ref, o_ref, *, negative_slope, no_imgnorm):
    # x_ref: (tm, K)   w_ref: (K, Np)   b_ref: (1, Np)   o_ref: (tm, Np)
    # Keep MXU operands in their native dtype (bf16 stays bf16); accumulate in
    # f32 and run the small epilogue in f32.
    feats = jnp.dot(x_ref[...], w_ref[...], preferred_element_type=jnp.float32)
    feats = feats + b_ref[...].astype(jnp.float32)

    # LeakyReLU(0.1)
    feats = jnp.where(feats >= 0, feats, negative_slope * feats)

    # l2norm along last dim: x * rsqrt(sum(x^2)).  Padded output columns are
    # exactly zero, so they do not perturb the sum.  (No epsilon: matches the
    # lavse reference, which also NaNs on an all-zero row.)
    if not no_imgnorm:
        sumsq = jnp.sum(feats * feats, axis=-1, keepdims=True)
        feats = feats * lax.rsqrt(sumsq)

    o_ref[...] = feats.astype(o_ref.dtype)


def _pick_tm(M, K, Np, itemsize, budget_bytes=20 << 20):
    """Row-tile size: 256-aligned, sized so double-buffered x/out tiles plus the
    resident weight stay well under the default scoped-VMEM limit on every
    generation (incl. v7x's 64 MiB VMEM / 32 MiB scoped default)."""
    fixed = 2 * (K * Np + Np) * itemsize          # weight + bias (assume 2x-buffered)
    avail = max(budget_bytes - fixed, 1 << 20)
    per_row = 2 * (K + Np) * itemsize             # double-buffered x tile + out tile
    tm = avail // per_row
    tm = (tm // 256) * 256
    tm = max(256, min(2048, tm))
    # Don't make the tile (much) larger than the padded row count.
    tm = min(tm, _round_up(M, 256))
    return int(tm)


def simple_precomp_forward(images, weight, bias, *, no_imgnorm=False, tm=None):
    """images: (B, R, img_dim); weight: (latent, img_dim) [PyTorch layout]; bias: (latent,)."""
    B, R, K = images.shape
    N = weight.shape[0]
    M = B * R
    dtype = images.dtype
    itemsize = jnp.dtype(dtype).itemsize

    Np = _round_up(N, 128)                  # lane-dense (multiple-of-128) output blocks
    if tm is None:
        tm = _pick_tm(M, K, Np, itemsize)
    tm = max(8, int(tm))
    Mp = _round_up(M, tm)                   # pad rows instead of asserting M % tm == 0

    x2d = images.reshape(M, K)
    if Mp != M:
        x2d = jnp.pad(x2d, ((0, Mp - M), (0, 0)))

    # PyTorch stores weight as (out, in); present it as (in, out) in the input
    # dtype so the kernel does x @ W on the MXU's native bf16/f32 path.
    # (If weight is static across calls, hoist this transpose out of the hot path.)
    w_in_out = weight.T.astype(dtype)
    b2d = bias.reshape(1, N)
    if Np != N:
        w_in_out = jnp.pad(w_in_out, ((0, 0), (0, Np - N)))
        b2d = jnp.pad(b2d, ((0, 0), (0, Np - N)))

    kernel = functools.partial(
        _simple_precomp_kernel, negative_slope=0.1, no_imgnorm=no_imgnorm
    )

    out2d = pl.pallas_call(
        kernel,
        out_shape=jax.ShapeDtypeStruct((Mp, Np), dtype),
        grid_spec=pltpu.PrefetchScalarGridSpec(
            num_scalar_prefetch=0,
            grid=(Mp // tm,),
            in_specs=[
                pl.BlockSpec((tm, K), lambda i: (i, 0)),      # row tile of x
                pl.BlockSpec((K, Np), lambda i: (0, 0)),      # resident weight
                pl.BlockSpec((1, Np), lambda i: (0, 0)),      # resident bias
            ],
            out_specs=pl.BlockSpec((tm, Np), lambda i: (i, 0)),
        ),
        compiler_params=pltpu.CompilerParams(
            dimension_semantics=("parallel",)                 # megacore-shardable on v7x
        ),
    )(x2d, w_in_out, b2d)

    return out2d[:M, :N].reshape(B, R, N)


def _reference_forward(images, weight, bias, no_imgnorm=False):
    feats = jnp.einsum("brk,nk->brn", images, weight) + bias
    feats = jnp.where(feats >= 0, feats, 0.1 * feats)
    if not no_imgnorm:
        norm = jnp.sqrt(jnp.sum(feats * feats, axis=-1, keepdims=True))
        feats = feats / norm
    return feats


if __name__ == "__main__":
    # Small shapes consistent with the module: (batch, regions, img_dim) -> latent
    B, R, img_dim, latent_size = 2, 8, 32, 64

    key = jax.random.PRNGKey(0)
    k_img, k_w = jax.random.split(key)

    images = jax.random.normal(k_img, (B, R, img_dim), dtype=jnp.float32)

    # Deterministic Xavier-style init (same rule as SimplePrecomp.init_weights)
    r = np.sqrt(6.0) / np.sqrt(img_dim + latent_size)
    weight = jax.random.uniform(
        k_w, (latent_size, img_dim), minval=-r, maxval=r, dtype=jnp.float32
    )
    bias = jnp.zeros((latent_size,), dtype=jnp.float32)

    out = simple_precomp_forward(images, weight, bias, no_imgnorm=False)
    out = jax.block_until_ready(out)

    ref = _reference_forward(images, weight, bias, no_imgnorm=False)
    np.testing.assert_allclose(np.asarray(out), np.asarray(ref), rtol=1e-5, atol=1e-5)

    print("KERNEL_OK")
</pallas_src>

<mosaic_0001>
module attributes {stable_mosaic.version = 11 : i64} {
  func.func @_simple_precomp_kernel(%arg0: i32, %arg1: memref<256x32xf32, #tpu.memory_space<vmem>>, %arg2: memref<32x128xf32, #tpu.memory_space<vmem>>, %arg3: memref<1x128xf32, #tpu.memory_space<vmem>>, %arg4: memref<256x128xf32, #tpu.memory_space<vmem>>) attributes {dimension_semantics = [#tpu.dimension_semantics<parallel>], iteration_bounds = array<i64: 1>, scalar_prefetch = 0 : i64, scratch_operands = 0 : i64, tpu.core_type = #tpu.core_type<tc>, window_params = [{transform_indices = @transform_0, window_bounds = array<i64: 256, 32>}, {pipeline_mode = #tpu.pipeline_mode<synchronous>, transform_indices = @transform_1, window_bounds = array<i64: 32, 128>}, {pipeline_mode = #tpu.pipeline_mode<synchronous>, transform_indices = @transform_2, window_bounds = array<i64: 1, 128>}, {transform_indices = @transform_3, window_bounds = array<i64: 256, 128>}]} {
    %c0 = arith.constant 0 : index
    %c0_0 = arith.constant 0 : index
    %0 = vector.load %arg1[%c0, %c0_0] : memref<256x32xf32, #tpu.memory_space<vmem>>, vector<256x32xf32>
    %c0_1 = arith.constant 0 : index
    %c0_2 = arith.constant 0 : index
    %1 = vector.load %arg2[%c0_1, %c0_2] : memref<32x128xf32, #tpu.memory_space<vmem>>, vector<32x128xf32>
    %cst = arith.constant dense<0.000000e+00> : vector<256x128xf32>
    %2 = tpu.matmul %0, %1, %cst {dimension_numbers = #tpu.dot_dimension_numbers<[1], [0], [0], [1], [0, 0, 1, 1], [], []>} : vector<256x32xf32>, vector<32x128xf32>, vector<256x128xf32> -> vector<256x128xf32>
    %c0_3 = arith.constant 0 : index
    %c0_4 = arith.constant 0 : index
    %3 = vector.load %arg3[%c0_3, %c0_4] : memref<1x128xf32, #tpu.memory_space<vmem>>, vector<1x128xf32>
    %4 = vector.broadcast %3 : vector<1x128xf32> to vector<256x128xf32>
    %5 = arith.addf %2, %4 : vector<256x128xf32>
    %cst_5 = arith.constant 0.000000e+00 : f32
    %6 = vector.broadcast %cst_5 : f32 to vector<256x128xf32>
    %7 = arith.cmpf oge, %5, %6 : vector<256x128xf32>
    %cst_6 = arith.constant 1.000000e-01 : f32
    %8 = vector.broadcast %cst_6 : f32 to vector<256x128xf32>
    %9 = arith.mulf %8, %5 : vector<256x128xf32>
    %10 = arith.select %7, %5, %9 : vector<256x128xi1>, vector<256x128xf32>
    %11 = arith.mulf %10, %10 : vector<256x128xf32>
    %cst_7 = arith.constant dense<0.000000e+00> : vector<256xf32>
    %12 = vector.multi_reduction <add>, %11, %cst_7 [1] : vector<256x128xf32> to vector<256xf32>
    %13 = vector.shape_cast %12 : vector<256xf32> to vector<256x1xf32>
    %14 = math.rsqrt %13 : vector<256x1xf32>
    %15 = vector.broadcast %14 : vector<256x1xf32> to vector<256x128xf32>
    %16 = arith.mulf %10, %15 : vector<256x128xf32>
    %c0_8 = arith.constant 0 : index
    %c0_9 = arith.constant 0 : index
    %17 = vector.load %arg4[%c0_8, %c0_9] : memref<256x128xf32, #tpu.memory_space<vmem>>, vector<256x128xf32>
    tpu.vector_store %arg4[%c0_8, %c0_9], %16 {strides = array<i32>} : memref<256x128xf32, #tpu.memory_space<vmem>>, vector<256x128xf32>,
    return
  }
  func.func @transform_0(%arg0: i32) -> (i32, i32) {
    %c0_i32 = arith.constant 0 : i32
    %c0_i32_0 = arith.constant 0 : i32
    return %arg0, %c0_i32 : i32, i32
  }
  func.func @transform_1(%arg0: i32) -> (i32, i32) {
    %c0_i32 = arith.constant 0 : i32
    %c0_i32_0 = arith.constant 0 : i32
    %c0_i32_1 = arith.constant 0 : i32
    return %c0_i32, %c0_i32_0 : i32, i32
  }
  func.func @transform_2(%arg0: i32) -> (i32, i32) {
    %c0_i32 = arith.constant 0 : i32
    %c0_i32_0 = arith.constant 0 : i32
    %c0_i32_1 = arith.constant 0 : i32
    return %c0_i32, %c0_i32_0 : i32, i32
  }
  func.func @transform_3(%arg0: i32) -> (i32, i32) {
    %c0_i32 = arith.constant 0 : i32
    %c0_i32_0 = arith.constant 0 : i32
    return %arg0, %c0_i32 : i32, i32
  }
}

</mosaic_0001>

<bundles_post_ra>
// kernel: tpu_custom_call.1
= control target key start
LH: loop header
LB: loop body
LE: loop exit
PB: predicated region body
PF: predicated region fallthrough
CT: control target
= control target key end

     0   :  { %vm55_vm0 = vcmask 261120   ;;  %s1671_s0 = inlined_call_operand.vmem [shape: f32[256,32], index: 0, kind: input, shape index: {}]   ;;  %s1672_s1 = inlined_call_operand.vmem [shape: f32[32,128], index: 1, kind: input, shape index: {}]   ;;  %s1673_s2 = inlined_call_operand.vmem [shape: f32[1,128], index: 2, kind: input, shape index: {}]   ;;  %s1674_s3 = inlined_call_operand.hbm [shape: f32[256,128], index: 3, kind: output, shape index: {}]  }
   0x1   :  { %v50_v0 = vld [vmem:[%s1672_s1 + $0x18] sm:$0xff]  ;;  %v49_v1 = vld [vmem:[%s1672_s1 + $0x10] sm:$0xff]  ;;  %v48_v2 = vld [vmem:[%s1672_s1 + $0x8] sm:$0xff] }
   0x2   :  { %164 = vmatpush.msra.mxu0 %v50_v0  ;;  %891 = vmatpush.msra.mxu1 %v50_v0  ;;  %v47_v3 = vld [vmem:[%s1672_s1] sm:$0xff] }
   0x3   :  { %892 = vmatpush.msra.mxu2 %v50_v0  ;;  %893 = vmatpush.msra.mxu3 %v50_v0  ;;  %v15_v4 = vld [vmem:[%s1671_s0] sm:$0xff] }
   0x4   :  { %165 = vmatpush.msra.mxu0 %v49_v1  ;;  %894 = vmatpush.msra.mxu1 %v49_v1  ;;  %v23_v5 = vld [vmem:[%s1671_s0 + $0x40] sm:$0xff] }
   0x5   :  { %895 = vmatpush.msra.mxu2 %v49_v1  ;;  %896 = vmatpush.msra.mxu3 %v49_v1  ;;  %v31_v6 = vld [vmem:[%s1671_s0 + $0x80] sm:$0xff] }
   0x6   :  { %166 = vmatpush.msra.mxu0 %v48_v2  ;;  %897 = vmatpush.msra.mxu1 %v48_v2  ;;  %v39_v7 = vld [vmem:[%s1671_s0 + $0xc0] sm:$0xff] }
   0x7   :  { %898 = vmatpush.msra.mxu2 %v48_v2  ;;  %899 = vmatpush.msra.mxu3 %v48_v2 }
   0x8   :  { %167 = vmatpush.msra.mxu0 %v47_v3  ;;  %900 = vmatpush.msra.mxu1 %v47_v3 }
   0x9   :  { %8 = vsyncpa [#allocation3], 0  ;;  %901 = vmatpush.msra.mxu2 %v47_v3  ;;  %902 = vmatpush.msra.mxu3 %v47_v3  ;;  %v16_v8 = vld [vmem:[%s1671_s0 + $0x8] sm:$0xff]  ;;  %v17_v12 = vld [vmem:[%s1671_s0 + $0x10] sm:$0xff]  ;;  %s847_s4 = sshll.u32 %s1674_s3, 4  ;;  %s998_s5 = smov 128   ;;  %s848_s4 = int_to_ptr.hbm [resolvable:$true] %s847_s4 }
   0xa   :  { %859 = vmatmul.msk.f32.vlgmr.msra.gmra.mxu0 %vm55_vm0, %v15_v4  ;;  %867 = vmatmul.msk.f32.vlgmr.msra.gmra.mxu1 %vm55_vm0, %v23_v5  ;;  %v24_v9 = vld [vmem:[%s1671_s0 + $0x48] sm:$0xff]  ;;  %v25_v13 = vld [vmem:[%s1671_s0 + $0x50] sm:$0xff]  ;;  %v18_v16 = vld [vmem:[%s1671_s0 + $0x18] sm:$0xff]  ;;  %s999_s6 = smov 8  }
   0xb   :  { %875 = vmatmul.msk.f32.vlgmr.msra.gmra.mxu2 %vm55_vm0, %v31_v6  ;;  %883 = vmatmul.msk.f32.vlgmr.msra.gmra.mxu3 %vm55_vm0, %v39_v7  ;;  %v32_v10 = vld [vmem:[%s1671_s0 + $0x88] sm:$0xff]  ;;  %v41_v14 = vld [vmem:[%s1671_s0 + $0xd0] sm:$0xff]  ;;  %v26_v17 = vld [vmem:[%s1671_s0 + $0x58] sm:$0xff] }
   0xc   :  { %v40_v11 = vld [vmem:[%s1671_s0 + $0xc8] sm:$0xff]  ;;  %v33_v15 = vld [vmem:[%s1671_s0 + $0x90] sm:$0xff]  ;;  %v34_v18 = vld [vmem:[%s1671_s0 + $0x98] sm:$0xff] }
   0xd   :  { %v42_v19 = vld [vmem:[%s1671_s0 + $0xd8] sm:$0xff]  ;;  %v19_v20 = vld [vmem:[%s1671_s0 + $0x20] sm:$0xff]  ;;  %v20_v24 = vld [vmem:[%s1671_s0 + $0x28] sm:$0xff] }
   0xe   :  { %v27_v21 = vld [vmem:[%s1671_s0 + $0x60] sm:$0xff]  ;;  %v28_v25 = vld [vmem:[%s1671_s0 + $0x68] sm:$0xff]  ;;  %v29_v28 = vld [vmem:[%s1671_s0 + $0x70] sm:$0xff] }
   0xf   :  { %v35_v22 = vld [vmem:[%s1671_s0 + $0xa0] sm:$0xff]  ;;  %v36_v26 = vld [vmem:[%s1671_s0 + $0xa8] sm:$0xff]  ;;  %v21_v29 = vld [vmem:[%s1671_s0 + $0x30] sm:$0xff] }
  0x10   :  { %v43_v23 = vld [vmem:[%s1671_s0 + $0xe0] sm:$0xff]  ;;  %v44_v27 = vld [vmem:[%s1671_s0 + $0xe8] sm:$0xff]  ;;  %v37_v30 = vld [vmem:[%s1671_s0 + $0xb0] sm:$0xff] }
  0x11   :  { %v45_v31 = vld [vmem:[%s1671_s0 + $0xf0] sm:$0xff]  ;;  %v30_v32 = vld [vmem:[%s1671_s0 + $0x78] sm:$0xff]  ;;  %v1163_v36 = vld [vmem:[%s1673_s2] ss:$0 sm:$0xff] }
  0x12   :  { %860 = vmatmul.msk.f32.gmra.mxu0 %vm55_vm0, %v16_v8  ;;  %868 = vmatmul.msk.f32.gmra.mxu1 %vm55_vm0, %v24_v9  ;;  %v22_v33 = vld [vmem:[%s1671_s0 + $0x38] sm:$0xff] }
  0x13   :  { %876 = vmatmul.msk.f32.gmra.mxu2 %vm55_vm0, %v32_v10  ;;  %884 = vmatmul.msk.f32.gmra.mxu3 %vm55_vm0, %v40_v11  ;;  %v38_v34 = vld [vmem:[%s1671_s0 + $0xb8] sm:$0xff] }
  0x14   :  { %v46_v35 = vld [vmem:[%s1671_s0 + $0xf8] sm:$0xff]  ;;  %s997_s0 = smov [#allocation2]  }
  0x15   :  { %s845_s2 = sshll.u32 %s997_s0, 4  ;;  %s846_s2 = int_to_ptr.vmem [resolvable:$true] %s845_s2 }
  0x1a   :  { %861 = vmatmul.msk.f32.gmra.mxu0 %vm55_vm0, %v17_v12  ;;  %869 = vmatmul.msk.f32.gmra.mxu1 %vm55_vm0, %v25_v13 }
  0x1b   :  { %885 = vmatmul.msk.f32.gmra.mxu3 %vm55_vm0, %v41_v14  ;;  %877 = vmatmul.msk.f32.gmra.mxu2 %vm55_vm0, %v33_v15 }
  0x22   :  { %862 = vmatmul.msk.f32.gmra.mxu0 %vm55_vm0, %v18_v16  ;;  %870 = vmatmul.msk.f32.gmra.mxu1 %vm55_vm0, %v26_v17 }
  0x23   :  { %878 = vmatmul.msk.f32.gmra.mxu2 %vm55_vm0, %v34_v18  ;;  %886 = vmatmul.msk.f32.gmra.mxu3 %vm55_vm0, %v42_v19 }
  0x2a   :  { %863 = vmatmul.msk.f32.gmra.mxu0 %vm55_vm0, %v19_v20  ;;  %871 = vmatmul.msk.f32.gmra.mxu1 %vm55_vm0, %v27_v21 }
  0x2b   :  { %879 = vmatmul.msk.f32.gmra.mxu2 %vm55_vm0, %v35_v22  ;;  %887 = vmatmul.msk.f32.gmra.mxu3 %vm55_vm0, %v43_v23 }
  0x32   :  { %864 = vmatmul.msk.f32.gmra.mxu0 %vm55_vm0, %v20_v24  ;;  %872 = vmatmul.msk.f32.gmra.mxu1 %vm55_vm0, %v28_v25 }
  0x33   :  { %880 = vmatmul.msk.f32.gmra.mxu2 %vm55_vm0, %v36_v26  ;;  %888 = vmatmul.msk.f32.gmra.mxu3 %vm55_vm0, %v44_v27 }
  0x3a   :  { %873 = vmatmul.msk.f32.gmra.mxu1 %vm55_vm0, %v29_v28  ;;  %865 = vmatmul.msk.f32.gmra.mxu0 %vm55_vm0, %v21_v29 }
  0x3b   :  { %881 = vmatmul.msk.f32.gmra.mxu2 %vm55_vm0, %v37_v30  ;;  %889 = vmatmul.msk.f32.gmra.mxu3 %vm55_vm0, %v45_v31 }
  0x42   :  { %874 = vmatmul.msk.f32.gmra.mxu1 %vm55_vm0, %v30_v32  ;;  %866 = vmatmul.msk.f32.gmra.mxu0 %vm55_vm0, %v22_v33 }
  0x43   :  { %882 = vmatmul.msk.f32.gmra.mxu2 %vm55_vm0, %v38_v34  ;;  %890 = vmatmul.msk.f32.gmra.mxu3 %vm55_vm0, %v46_v35 }
  0x87   :  { %v169_v37 = vpop.f32.mrf.mxu0  ;;  %v193_v38 = vpop.f32.mrf.mxu1 }
  0x88   :  { %v170_v39 = vadd.f32 %v1163_v36, %v169_v37  ;;  %v194_v40 = vadd.f32 %v1163_v36, %v193_v38 }
  0x8a   :  { %v297_v41 = vmul.f32 0.1, %v170_v39  ;;  %v305_v42 = vmul.f32 0.1, %v194_v40  ;;  %vm273_vm1 = vcmp.ge.f32.partialorder %v194_v40, 0.0  ;;  %vm265_vm2 = vcmp.ge.f32.partialorder %v170_v39, 0.0 }
  0x8c   :  { %v1167_v43 = vsel %vm273_vm1, %v194_v40, %v305_v42  ;;  %v1169_v44 = vsel %vm265_vm2, %v170_v39, %v297_v41 }
  0x8d   :  { %v369_v45 = vmul.f32 %v1167_v43, %v1167_v43  ;;  %v361_v46 = vmul.f32 %v1169_v44, %v1169_v44 }
  0x8e   :  { %v217_v47 = vpop.f32.mrf.mxu2  ;;  %v241_v48 = vpop.f32.mrf.mxu3 }
  0x8f   :  { %v218_v49 = vadd.f32 %v1163_v36, %v217_v47  ;;  %v242_v50 = vadd.f32 %v1163_v36, %v241_v48  ;;  %409 = vadd.xlane.f32.xlu2 %v369_v45  ;;  %393 = vadd.xlane.f32.xlu0 %v361_v46  ;;  %v172_v51 = vpop.f32.mrf.mxu0  ;;  %v196_v52 = vpop.f32.mrf.mxu1 }
  0x90   :  { %v173_v55 = vadd.f32 %v1163_v36, %v172_v51  ;;  %v197_v6 = vadd.f32 %v1163_v36, %v196_v52 }
  0x91   :  { %v313_v53 = vmul.f32 0.1, %v218_v49  ;;  %v321_v54 = vmul.f32 0.1, %v242_v50  ;;  %vm281_vm3 = vcmp.ge.f32.partialorder %v218_v49, 0.0  ;;  %vm289_vm4 = vcmp.ge.f32.partialorder %v242_v50, 0.0 }
  0x92   :  { %v298_v60 = vmul.f32 0.1, %v173_v55  ;;  %vm266_vm5 = vcmp.ge.f32.partialorder %v173_v55, 0.0  ;;  %v306_v14 = vmul.f32 0.1, %v197_v6  ;;  %vm274_vm9 = vcmp.ge.f32.partialorder %v197_v6, 0.0 }
  0x93   :  { %v1178_v56 = vsel %vm281_vm3, %v218_v49, %v313_v53  ;;  %v1180_v57 = vsel %vm289_vm4, %v242_v50, %v321_v54 }
  0x94   :  { %v377_v58 = vmul.f32 %v1178_v56, %v1178_v56  ;;  %v385_v59 = vmul.f32 %v1180_v57, %v1180_v57  ;;  %v1190_v7 = vsel %vm266_vm5, %v173_v55, %v298_v60  ;;  %v1208_v25 = vsel %vm274_vm9, %v197_v6, %v306_v14 }
  0x95   :  { %v362_v13 = vmul.f32 %v1190_v7, %v1190_v7  ;;  %v370_v32 = vmul.f32 %v1208_v25, %v1208_v25 }
  0x96   :  { %v220_v61 = vpop.f32.mrf.mxu2  ;;  %v244_v62 = vpop.f32.mrf.mxu3  ;;  %425 = vadd.xlane.f32.xlu1 %v377_v58 }
  0x97   :  { %v221_v63 = vadd.f32 %v1163_v36, %v220_v61  ;;  %v245_v0 = vadd.f32 %v1163_v36, %v244_v62  ;;  %441 = vadd.xlane.f32.xlu0 %v385_v59  ;;  %v175_v1 = vpop.f32.mrf.mxu0  ;;  %v199_v2 = vpop.f32.mrf.mxu1 }
  0x98   :  { %v176_v3 = vadd.f32 %v1163_v36, %v175_v1  ;;  %v200_v23 = vadd.f32 %v1163_v36, %v199_v2 }
  0x99   :  { %v314_v4 = vmul.f32 0.1, %v221_v63  ;;  %v322_v5 = vmul.f32 0.1, %v245_v0  ;;  %vm290_vm6 = vcmp.ge.f32.partialorder %v245_v0, 0.0  ;;  %vm282_vm7 = vcmp.ge.f32.partialorder %v221_v63, 0.0 }
  0x9a   :  { %v299_v12 = vmul.f32 0.1, %v176_v3  ;;  %vm267_vm8 = vcmp.ge.f32.partialorder %v176_v3, 0.0  ;;  %v307_v31 = vmul.f32 0.1, %v200_v23  ;;  %vm275_vm13 = vcmp.ge.f32.partialorder %v200_v23, 0.0 }
  0x9b   :  { %v1192_v8 = vsel %vm290_vm6, %v245_v0, %v322_v5  ;;  %v1194_v9 = vsel %vm282_vm7, %v221_v63, %v314_v4 }
  0x9c   :  { %v386_v10 = vmul.f32 %v1192_v8, %v1192_v8  ;;  %v378_v11 = vmul.f32 %v1194_v9, %v1194_v9  ;;  %v1206_v24 = vsel %vm267_vm8, %v176_v3, %v299_v12  ;;  %v1225_v45 = vsel %vm275_vm13, %v200_v23, %v307_v31 }
  0x9d   :  { %v363_v30 = vmul.f32 %v1206_v24, %v1206_v24  ;;  %v371_v49 = vmul.f32 %v1225_v45, %v1225_v45 }
  0x9e   :  { %v247_v15 = vpop.f32.mrf.mxu3  ;;  %443 = vadd.xlane.f32.xlu1 %v386_v10  ;;  %427 = vadd.xlane.f32.xlu2 %v378_v11  ;;  %v223_v16 = vpop.f32.mrf.mxu2 }
  0x9f   :  { %v248_v17 = vadd.f32 %v1163_v36, %v247_v15  ;;  %395 = vadd.xlane.f32.xlu0 %v362_v13  ;;  %v202_v18 = vpop.f32.mrf.mxu1  ;;  %v178_v19 = vpop.f32.mrf.mxu0  ;;  %v224_v21 = vadd.f32 %v1163_v36, %v223_v16 }
  0xa0   :  { %v203_v20 = vadd.f32 %v1163_v36, %v202_v18  ;;  %v179_v42 = vadd.f32 %v1163_v36, %v178_v19 }
  0xa1   :  { %v323_v22 = vmul.f32 0.1, %v248_v17  ;;  %vm291_vm10 = vcmp.ge.f32.partialorder %v248_v17, 0.0  ;;  %v315_v28 = vmul.f32 0.1, %v224_v21  ;;  %vm283_vm12 = vcmp.ge.f32.partialorder %v224_v21, 0.0 }
  0xa2   :  { %v308_v26 = vmul.f32 0.1, %v203_v20  ;;  %vm276_vm11 = vcmp.ge.f32.partialorder %v203_v20, 0.0  ;;  %v300_v51 = vmul.f32 0.1, %v179_v42  ;;  %vm268_vm0 = vcmp.ge.f32.partialorder %v179_v42, 0.0 }
  0xa3   :  { %v1210_v27 = vsel %vm291_vm10, %v248_v17, %v323_v22  ;;  %v1222_v40 = vsel %vm283_vm12, %v224_v21, %v315_v28 }
  0xa4   :  { %v387_v29 = vmul.f32 %v1210_v27, %v1210_v27  ;;  %v1218_v35 = vsel %vm276_vm11, %v203_v20, %v308_v26  ;;  %v379_v48 = vmul.f32 %v1222_v40, %v1222_v40  ;;  %v1240_v60 = vsel %vm268_vm0, %v179_v42, %v300_v51 }
  0xa5   :  { %v372_v46 = vmul.f32 %v1218_v35, %v1218_v35  ;;  %v364_v2 = vmul.f32 %v1240_v60, %v1240_v60 }
  0xa6   :  { %445 = vadd.xlane.f32.xlu2 %v387_v29  ;;  %397 = vadd.xlane.f32.xlu1 %v363_v30  ;;  %v226_v33 = vpop.f32.mrf.mxu2  ;;  %v250_v34 = vpop.f32.mrf.mxu3 }
  0xa7   :  { %411 = vadd.xlane.f32.xlu0 %v370_v32  ;;  %v181_v37 = vpop.f32.mrf.mxu0  ;;  %v251_v39 = vadd.f32 %v1163_v36, %v250_v34  ;;  %v205_v41 = vpop.f32.mrf.mxu1  ;;  %v227_v59 = vadd.f32 %v1163_v36, %v226_v33 }
  0xa8   :  { %v182_v38 = vadd.f32 %v1163_v36, %v181_v37  ;;  %v206_v55 = vadd.f32 %v1163_v36, %v205_v41 }
  0xa9   :  { %v324_v50 = vmul.f32 0.1, %v251_v39  ;;  %vm292_vm15 = vcmp.ge.f32.partialorder %v251_v39, 0.0  ;;  %v316_v4 = vmul.f32 0.1, %v227_v59  ;;  %vm284_vm3 = vcmp.ge.f32.partialorder %v227_v59, 0.0 }
  0xaa   :  { %v301_v47 = vmul.f32 0.1, %v182_v38  ;;  %vm269_vm14 = vcmp.ge.f32.partialorder %v182_v38, 0.0  ;;  %v309_v1 = vmul.f32 0.1, %v206_v55  ;;  %vm277_vm2 = vcmp.ge.f32.partialorder %v206_v55, 0.0 }
  0xab   :  { %v1237_v58 = vsel %vm292_vm15, %v251_v39, %v324_v50  ;;  %v1255_v15 = vsel %vm284_vm3, %v227_v59, %v316_v4 }
  0xac   :  { %v1234_v54 = vsel %vm269_vm14, %v182_v38, %v301_v47  ;;  %v388_v0 = vmul.f32 %v1237_v58, %v1237_v58  ;;  %v1252_v13 = vsel %vm277_vm2, %v206_v55, %v309_v1  ;;  %v380_v20 = vmul.f32 %v1255_v15, %v1255_v15 }
  0xad   :  { %v365_v61 = vmul.f32 %v1234_v54, %v1234_v54  ;;  %v373_v18 = vmul.f32 %v1252_v13, %v1252_v13 }
  0xae   :  { %415 = vadd.xlane.f32.xlu2 %v372_v46  ;;  %413 = vadd.xlane.f32.xlu1 %v371_v49  ;;  %v229_v52 = vpop.f32.mrf.mxu2  ;;  %v253_v5 = vpop.f32.mrf.mxu3 }
  0xaf   :  { %429 = vadd.xlane.f32.xlu0 %v379_v48  ;;  %v230_v53 = vadd.f32 %v1163_v36, %v229_v52  ;;  %v208_v62 = vpop.f32.mrf.mxu1  ;;  %v184_v3 = vpop.f32.mrf.mxu0  ;;  %v254_v14 = vadd.f32 %v1163_v36, %v253_v5 }
  0xb0   :  { %v185_v10 = vadd.f32 %v1163_v36, %v184_v3  ;;  %v209_v32 = vadd.f32 %v1163_v36, %v208_v62 }
  0xb1   :  { %v317_v63 = vmul.f32 0.1, %v230_v53  ;;  %vm285_vm1 = vcmp.ge.f32.partialorder %v230_v53, 0.0  ;;  %v325_v22 = vmul.f32 0.1, %v254_v14  ;;  %vm293_vm6 = vcmp.ge.f32.partialorder %v254_v14, 0.0 }
  0xb2   :  { %v302_v17 = vmul.f32 0.1, %v185_v10  ;;  %vm270_vm4 = vcmp.ge.f32.partialorder %v185_v10, 0.0  ;;  %v310_v46 = vmul.f32 0.1, %v209_v32  ;;  %vm278_vm9 = vcmp.ge.f32.partialorder %v209_v32, 0.0 }
  0xb3   :  { %v1249_v11 = vsel %vm285_vm1, %v230_v53, %v317_v63  ;;  %v1270_v33 = vsel %vm293_vm6, %v254_v14, %v325_v22 }
  0xb4   :  { %v381_v16 = vmul.f32 %v1249_v11, %v1249_v11  ;;  %v1264_v29 = vsel %vm270_vm4, %v185_v10, %v302_v17  ;;  %v389_v41 = vmul.f32 %v1270_v33, %v1270_v33  ;;  %v1285_v55 = vsel %vm278_vm9, %v209_v32, %v310_v46 }
  0xb5   :  { %v366_v34 = vmul.f32 %v1264_v29, %v1264_v29  ;;  %v374_v63 = vmul.f32 %v1285_v55, %v1285_v55 }
  0xb6   :  { %401 = vadd.xlane.f32.xlu2 %v365_v61  ;;  %399 = vadd.xlane.f32.xlu1 %v364_v2  ;;  %v232_v6 = vpop.f32.mrf.mxu2  ;;  %v256_v37 = vpop.f32.mrf.mxu3 }
  0xb7   :  { %447 = vadd.xlane.f32.xlu0 %v388_v0  ;;  %v233_v12 = vadd.f32 %v1163_v36, %v232_v6  ;;  %v211_v21 = vpop.f32.mrf.mxu1  ;;  %v187_v23 = vpop.f32.mrf.mxu0  ;;  %v257_v6 = vadd.f32 %v1163_v36, %v256_v37 }
  0xb8   :  { %v212_v28 = vadd.f32 %v1163_v36, %v211_v21  ;;  %v188_v30 = vadd.f32 %v1163_v36, %v187_v23 }
  0xb9   :  { %v318_v19 = vmul.f32 0.1, %v233_v12  ;;  %vm286_vm5 = vcmp.ge.f32.partialorder %v233_v12, 0.0  ;;  %vm294_vm13 = vcmp.ge.f32.partialorder %v257_v6, 0.0 }
  0xba   :  { %v311_v38 = vmul.f32 0.1, %v212_v28  ;;  %v303_v42 = vmul.f32 0.1, %v188_v30  ;;  %vm279_vm7 = vcmp.ge.f32.partialorder %v212_v28, 0.0  ;;  %vm271_vm8 = vcmp.ge.f32.partialorder %v188_v30, 0.0 }
  0xbb   :  { %v1267_v31 = vsel %vm286_vm5, %v233_v12, %v318_v19  ;;  %v326_v19 = vmul.f32 0.1, %v257_v6 }
  0xbc   :  { %v382_v39 = vmul.f32 %v1267_v31, %v1267_v31  ;;  %v1279_v50 = vsel %vm279_vm7, %v212_v28, %v311_v38  ;;  %v1282_v52 = vsel %vm271_vm8, %v188_v30, %v303_v42 }
  0xbd   :  { %v375_v59 = vmul.f32 %v1279_v50, %v1279_v50  ;;  %v367_v62 = vmul.f32 %v1282_v52, %v1282_v52 }
  0xbe   :  { %433 = vadd.xlane.f32.xlu2 %v381_v16  ;;  %431 = vadd.xlane.f32.xlu1 %v380_v20  ;;  %v235_v26 = vpop.f32.mrf.mxu2  ;;  %v259_v1 = vpop.f32.mrf.mxu3 }
  0xbf   :  { %417 = vadd.xlane.f32.xlu0 %v373_v18  ;;  %v214_v47 = vpop.f32.mrf.mxu1  ;;  %v236_v53 = vadd.f32 %v1163_v36, %v235_v26  ;;  %v190_v3 = vpop.f32.mrf.mxu0  ;;  %v260_v14 = vadd.f32 %v1163_v36, %v259_v1  ;;  %v1309_v26 = vsel %vm294_vm13, %v257_v6, %v326_v19 }
  0xc0   :  { %v215_v51 = vadd.f32 %v1163_v36, %v214_v47  ;;  %v191_v10 = vadd.f32 %v1163_v36, %v190_v3  ;;  %v390_v32 = vmul.f32 %v1309_v26, %v1309_v26 }
  0xc1   :  { %v319_v2 = vmul.f32 0.1, %v236_v53  ;;  %vm287_vm12 = vcmp.ge.f32.partialorder %v236_v53, 0.0  ;;  %v327_v21 = vmul.f32 0.1, %v260_v14  ;;  %vm295_vm15 = vcmp.ge.f32.partialorder %v260_v14, 0.0 }
  0xc2   :  { %v312_v0 = vmul.f32 0.1, %v215_v51  ;;  %vm280_vm11 = vcmp.ge.f32.partialorder %v215_v51, 0.0  ;;  %v304_v20 = vmul.f32 0.1, %v191_v10  ;;  %vm272_vm14 = vcmp.ge.f32.partialorder %v191_v10, 0.0 }
  0xc3   :  { %v1299_v12 = vsel %vm287_vm12, %v236_v53, %v319_v2  ;;  %v1313_v30 = vsel %vm295_vm15, %v260_v14, %v327_v21 }
  0xc4   :  { %v1295_v5 = vsel %vm280_vm11, %v215_v51, %v312_v0  ;;  %v383_v18 = vmul.f32 %v1299_v12, %v1299_v12  ;;  %v1311_v28 = vsel %vm272_vm14, %v191_v10, %v304_v20  ;;  %v391_v38 = vmul.f32 %v1313_v30, %v1313_v30 }
  0xc5   :  { %v376_v17 = vmul.f32 %v1295_v5, %v1295_v5 }
  0xc6   :  { %403 = vadd.xlane.f32.xlu2 %v366_v34  ;;  %449 = vadd.xlane.f32.xlu1 %v389_v41  ;;  %v238_v48 = vpop.f32.mrf.mxu2  ;;  %v262_v22 = vpop.f32.mrf.mxu3  ;;  %v368_v34 = vmul.f32 %v1311_v28, %v1311_v28 }
  0xc7   :  { %435 = vadd.xlane.f32.xlu0 %v382_v39  ;;  %v239_v49 = vadd.f32 %v1163_v36, %v238_v48  ;;  %v263_v23 = vadd.f32 %v1163_v36, %v262_v22 }
  0xc9   :  { %v320_v61 = vmul.f32 0.1, %v239_v49  ;;  %vm288_vm10 = vcmp.ge.f32.partialorder %v239_v49, 0.0  ;;  %v328_v37 = vmul.f32 0.1, %v263_v23  ;;  %vm296_vm0 = vcmp.ge.f32.partialorder %v263_v23, 0.0 }
  0xcb   :  { %v1293_v4 = vsel %vm288_vm10, %v239_v49, %v320_v61  ;;  %v1321_v36 = vsel %vm296_vm0, %v263_v23, %v328_v37 }
  0xcc   :  { %v384_v16 = vmul.f32 %v1293_v4, %v1293_v4  ;;  %v392_v39 = vmul.f32 %v1321_v36, %v1321_v36 }
  0xce   :  { %421 = vadd.xlane.f32.xlu2 %v375_v59  ;;  %419 = vadd.xlane.f32.xlu1 %v374_v63 }
  0xcf   :  { %405 = vadd.xlane.f32.xlu0 %v367_v62 }
  0xd6   :  { %439 = vadd.xlane.f32.xlu2 %v384_v16  ;;  %437 = vadd.xlane.f32.xlu1 %v383_v18 }
  0xd7   :  { %423 = vadd.xlane.f32.xlu0 %v376_v17 }
  0xde   :  { %451 = vadd.xlane.f32.xlu2 %v390_v32  ;;  %407 = vadd.xlane.f32.xlu1 %v368_v34 }
  0xdf   :  { %453 = vadd.xlane.f32.xlu0 %v391_v38 }
  0xe6   :  { %455 = vadd.xlane.f32.xlu1 %v392_v39 }
 0x102   :  { %v410_v41 = vpop.xlane.xlu2 %409  ;;  %v394_v42 = vpop.xlane.xlu0 %393 }
 0x103   :  { %907 = vrsqrt.f32 %v410_v41  ;;  %vm543_vm1 = vweird.f32 %v410_v41  ;;  %vm463_vm5 = vweird.f32 %v394_v42 }
 0x104   :  { %909 = vrsqrt.f32 %v394_v42 }
 0x109   :  { %v908_v46 = vpop.eup %907  ;;  %v426_v47 = vpop.xlane.xlu1 %425 }
 0x10a   :  { %v910_v48 = vpop.eup %909  ;;  %v538_v49 = vmul.f32 %v908_v46, %v410_v41  ;;  %911 = vrsqrt.f32 %v426_v47  ;;  %v442_v51 = vpop.xlane.xlu0 %441  ;;  %vm544_vm2 = vweird.f32 %v908_v46  ;;  %vm623_vm9 = vweird.f32 %v426_v47 }
 0x10b   :  { %v458_v53 = vmul.f32 %v910_v48, %v394_v42  ;;  %913 = vrsqrt.f32 %v442_v51  ;;  %vm464_vm3 = vweird.f32 %v910_v48  ;;  %vm545_vm4 = vmor %vm543_vm1, %vm544_vm2  ;;  %vm703_vm11 = vweird.f32 %v442_v51 }
 0x10c   :  { %v539_v59 = vmul.f32 %v908_v46, %v538_v49  ;;  %vm465_vm6 = vmor %vm463_vm5, %vm464_vm3 }
 0x10d   :  { %v459_v61 = vmul.f32 %v910_v48, %v458_v53 }
 0x10e   :  { %v540_v62 = vmul.f32 0.5, %v539_v59 }
 0x10f   :  { %v460_v63 = vmul.f32 0.5, %v459_v61 }
 0x110   :  { %v912_v0 = vpop.eup %911  ;;  %v541_v1 = vsub.f32 1.5, %v540_v62 }
 0x111   :  { %v914_v2 = vpop.eup %913  ;;  %v461_v3 = vsub.f32 1.5, %v460_v63  ;;  %v618_v6 = vmul.f32 %v912_v0, %v426_v47  ;;  %v1325_v10 = vpop.xlane.xlu1 %443  ;;  %vm624_vm7 = vweird.f32 %v912_v0 }
 0x112   :  { %v1327_v14 = vpop.xlane.xlu2 %427  ;;  %v542_v16 = vmul.f32 %v908_v46, %v541_v1  ;;  %v698_v17 = vmul.f32 %v914_v2, %v442_v51  ;;  %915 = vrsqrt.f32 %v1325_v10  ;;  %v1330_v18 = vpop.xlane.xlu0 %395  ;;  %vm704_vm8 = vweird.f32 %v914_v2  ;;  %vm625_vm10 = vmor %vm623_vm9, %vm624_vm7 }
 0x113   :  { %v462_v19 = vmul.f32 %v910_v48, %v461_v3  ;;  %v619_v20 = vmul.f32 %v912_v0, %v618_v6  ;;  %917 = vrsqrt.f32 %v1327_v14  ;;  %vm705_vm12 = vmor %vm703_vm11, %vm704_vm8  ;;  %vm713_vm14 = vweird.f32 %v1325_v10 }
 0x114   :  { %v546_v21 = vsel %vm545_vm4, %v908_v46, %v542_v16  ;;  %v699_v22 = vmul.f32 %v914_v2, %v698_v17  ;;  %919 = vrsqrt.f32 %v1330_v18  ;;  %vm633_vm15 = vweird.f32 %v1327_v14 }
 0x115   :  { %v785_v23 = vmul.f32 %v546_v21, %v1167_v43  ;;  %v466_v32 = vsel %vm465_vm6, %v910_v48, %v462_v19  ;;  %v620_v34 = vmul.f32 0.5, %v619_v20  ;;  %vm473_vm3 = vweird.f32 %v1330_v18 }
 0x116   :  { %v777_v37 = vmul.f32 %v466_v32, %v1169_v44  ;;  %v700_v38 = vmul.f32 0.5, %v699_v22 }
 0x117   :  { %817 = vst [vmem:[#allocation2 + $0x40] sm:$0xff] %v785_v23  ;;  %v621_v39 = vsub.f32 1.5, %v620_v34 }
 0x118   :  { %v916_v41 = vpop.eup %915  ;;  %809 = vst [vmem:[#allocation2] sm:$0xff] %v777_v37  ;;  %v701_v42 = vsub.f32 1.5, %v700_v38 }
 0x119   :  { %v918_v49 = vpop.eup %917  ;;  %v622_v46 = vmul.f32 %v912_v0, %v621_v39  ;;  %v708_v53 = vmul.f32 %v916_v41, %v1325_v10  ;;  %v1339_v43 = vpop.xlane.xlu1 %397  ;;  %vm714_vm13 = vweird.f32 %v916_v41 }
 0x11a   :  { %v1337_v59 = vpop.xlane.xlu2 %445  ;;  %v920_v48 = vpop.eup %919  ;;  %v702_v44 = vmul.f32 %v914_v2, %v701_v42  ;;  %v628_v61 = vmul.f32 %v918_v49, %v1327_v14  ;;  %vm634_vm0 = vweird.f32 %v918_v49  ;;  %vm715_vm2 = vmor %vm713_vm14, %vm714_vm13  ;;  %vm483_vm8 = vweird.f32 %v1339_v43 }
 0x11b   :  { %921 = vrsqrt.f32 %v1337_v59  ;;  %v1343_v62 = vpop.xlane.xlu0 %411  ;;  %v626_v63 = vsel %vm625_vm10, %v912_v0, %v622_v46  ;;  %v709_v47 = vmul.f32 %v916_v41, %v708_v53  ;;  %v468_v1 = vmul.f32 %v920_v48, %v1330_v18  ;;  %vm635_vm4 = vmor %vm633_vm15, %vm634_vm0 }
 0x11c   :  { %v793_v3 = vmul.f32 %v626_v63, %v1178_v56  ;;  %v706_v6 = vsel %vm705_vm12, %v914_v2, %v702_v44  ;;  %v629_v16 = vmul.f32 %v918_v49, %v628_v61  ;;  %923 = vrsqrt.f32 %v1339_v43 }
 0x11d   :  { %v801_v17 = vmul.f32 %v706_v6, %v1180_v57  ;;  %v710_v19 = vmul.f32 0.5, %v709_v47  ;;  %v469_v51 = vmul.f32 %v920_v48, %v468_v1  ;;  %925 = vrsqrt.f32 %v1343_v62 }
 0x11e   :  { %825 = vst [vmem:[#allocation2 + $0x80] sm:$0xff] %v793_v3  ;;  %v630_v20 = vmul.f32 0.5, %v629_v16  ;;  %vm474_vm1 = vweird.f32 %v920_v48  ;;  %vm723_vm6 = vweird.f32 %v1337_v59  ;;  %vm553_vm9 = vweird.f32 %v1343_v62 }
 0x11f   :  { %833 = vst [vmem:[#allocation2 + $0xc0] sm:$0xff] %v801_v17  ;;  %v711_v0 = vsub.f32 1.5, %v710_v19  ;;  %v470_v21 = vmul.f32 0.5, %v469_v51  ;;  %vm475_vm5 = vmor %vm473_vm3, %vm474_vm1 }
 0x120   :  { %v631_v56 = vsub.f32 1.5, %v630_v20 }
 0x121   :  { %v1351_v22 = vpop.eup %921  ;;  %v712_v57 = vmul.f32 %v916_v41, %v711_v0  ;;  %v471_v2 = vsub.f32 1.5, %v470_v21  ;;  %v1359_v34 = vpop.xlane.xlu1 %413 }
 0x122   :  { %v718_v23 = vmul.f32 %v1351_v22, %v1337_v59  ;;  %v1357_v32 = vpop.xlane.xlu2 %415  ;;  %v632_v37 = vmul.f32 %v918_v49, %v631_v56  ;;  %v924_v38 = vpop.eup %923  ;;  %vm724_vm7 = vweird.f32 %v1351_v22  ;;  %vm563_vm3 = vweird.f32 %v1359_v34 }
 0x123   :  { %927 = vrsqrt.f32 %v1357_v32  ;;  %v1363_v10 = vpop.xlane.xlu0 %429  ;;  %v716_v39 = vsel %vm715_vm2, %v916_v41, %v712_v57  ;;  %v472_v42 = vmul.f32 %v920_v48, %v471_v2  ;;  %v926_v53 = vpop.eup %925  ;;  %v478_v18 = vmul.f32 %v924_v38, %v1339_v43  ;;  %vm725_vm10 = vmor %vm723_vm6, %vm724_vm7 }
 0x124   :  { %v719_v46 = vmul.f32 %v1351_v22, %v718_v23  ;;  %929 = vrsqrt.f32 %v1359_v34  ;;  %v802_v44 = vmul.f32 %v716_v39, %v1192_v8  ;;  %v636_v61 = vsel %vm635_vm4, %v918_v49, %v632_v37 }
 0x125   :  { %v794_v63 = vmul.f32 %v636_v61, %v1194_v9  ;;  %v476_v47 = vsel %vm475_vm5, %v920_v48, %v472_v42  ;;  %v548_v14 = vmul.f32 %v926_v53, %v1343_v62  ;;  %v479_v3 = vmul.f32 %v924_v38, %v478_v18 }
 0x126   :  { %v720_v41 = vmul.f32 0.5, %v719_v46  ;;  %834 = vst [vmem:[#allocation2 + $0xc8] sm:$0xff] %v802_v44  ;;  %v778_v1 = vmul.f32 %v476_v47, %v1190_v7  ;;  %931 = vrsqrt.f32 %v1363_v10  ;;  %vm484_vm11 = vweird.f32 %v924_v38 }
 0x127   :  { %826 = vst [vmem:[#allocation2 + $0x88] sm:$0xff] %v794_v63  ;;  %v549_v8 = vmul.f32 %v926_v53, %v548_v14  ;;  %v480_v9 = vmul.f32 0.5, %v479_v3  ;;  %vm554_vm12 = vweird.f32 %v926_v53  ;;  %vm485_vm13 = vmor %vm483_vm8, %vm484_vm11  ;;  %vm573_vm14 = vweird.f32 %v1357_v32 }
 0x128   :  { %v721_v6 = vsub.f32 1.5, %v720_v41  ;;  %810 = vst [vmem:[#allocation2 + $0x8] sm:$0xff] %v778_v1  ;;  %vm555_vm15 = vmor %vm553_vm9, %vm554_vm12  ;;  %vm643_vm6 = vweird.f32 %v1363_v10 }
 0x129   :  { %v1378_v49 = vpop.eup %927  ;;  %v550_v16 = vmul.f32 0.5, %v549_v8  ;;  %v1389_v19 = vpop.xlane.xlu1 %399  ;;  %v481_v51 = vsub.f32 1.5, %v480_v9 }
 0x12a   :  { %v1381_v48 = vpop.eup %929  ;;  %v722_v7 = vmul.f32 %v1351_v22, %v721_v6  ;;  %v568_v17 = vmul.f32 %v1378_v49, %v1357_v32  ;;  %v1387_v59 = vpop.xlane.xlu2 %401  ;;  %vm574_vm0 = vweird.f32 %v1378_v49  ;;  %vm493_vm12 = vweird.f32 %v1389_v19 }
 0x12b   :  { %v558_v20 = vmul.f32 %v1381_v48, %v1359_v34  ;;  %933 = vrsqrt.f32 %v1387_v59  ;;  %v1394_v0 = vpop.xlane.xlu0 %447  ;;  %v551_v56 = vsub.f32 1.5, %v550_v16  ;;  %v482_v37 = vmul.f32 %v924_v38, %v481_v51  ;;  %vm575_vm2 = vmor %vm573_vm14, %vm574_vm0 }
 0x12c   :  { %v726_v21 = vsel %vm725_vm10, %v1351_v22, %v722_v7  ;;  %v569_v57 = vmul.f32 %v1378_v49, %v568_v17  ;;  %v1398_v2 = vpop.eup %931  ;;  %935 = vrsqrt.f32 %v1389_v19  ;;  %vm564_vm1 = vweird.f32 %v1381_v48 }
 0x12d   :  { %v803_v23 = vmul.f32 %v726_v21, %v1210_v27  ;;  %v559_v39 = vmul.f32 %v1381_v48, %v558_v20  ;;  %v552_v42 = vmul.f32 %v926_v53, %v551_v56  ;;  %v638_v22 = vmul.f32 %v1398_v2, %v1363_v10  ;;  %vm565_vm5 = vmor %vm563_vm3, %vm564_vm1 }
 0x12e   :  { %v570_v46 = vmul.f32 0.5, %v569_v57  ;;  %v486_v44 = vsel %vm485_vm13, %v924_v38, %v482_v37  ;;  %937 = vrsqrt.f32 %v1394_v0  ;;  %vm644_vm4 = vweird.f32 %v1398_v2 }
 0x12f   :  { %835 = vst [vmem:[#allocation2 + $0xd0] sm:$0xff] %v803_v23  ;;  %v560_v27 = vmul.f32 0.5, %v559_v39  ;;  %v779_v43 = vmul.f32 %v486_v44, %v1206_v24  ;;  %v556_v61 = vsel %vm555_vm15, %v926_v53, %v552_v42  ;;  %v639_v63 = vmul.f32 %v1398_v2, %v638_v22  ;;  %vm645_vm7 = vmor %vm643_vm6, %vm644_vm4 }
 0x130   :  { %v571_v18 = vsub.f32 1.5, %v570_v46  ;;  %v786_v41 = vmul.f32 %v556_v61, %v1208_v25  ;;  %vm503_vm8 = vweird.f32 %v1387_v59  ;;  %vm733_vm13 = vweird.f32 %v1394_v0 }
 0x131   :  { %v1414_v47 = vpop.eup %933  ;;  %v561_v14 = vsub.f32 1.5, %v560_v27  ;;  %811 = vst [vmem:[#allocation2 + $0x10] sm:$0xff] %v779_v43  ;;  %v640_v38 = vmul.f32 0.5, %v639_v63  ;;  %v1423_v24 = vpop.xlane.xlu1 %431 }
 0x132   :  { %v572_v62 = vmul.f32 %v1378_v49, %v571_v18  ;;  %v498_v1 = vmul.f32 %v1414_v47, %v1387_v59  ;;  %v1421_v3 = vpop.xlane.xlu2 %433  ;;  %v1425_v53 = vpop.eup %935  ;;  %818 = vst [vmem:[#allocation2 + $0x48] sm:$0xff] %v786_v41  ;;  %vm504_vm9 = vweird.f32 %v1414_v47 }
 0x133   :  { %v562_v25 = vmul.f32 %v1381_v48, %v561_v14  ;;  %939 = vrsqrt.f32 %v1421_v3  ;;  %v1435_v6 = vpop.xlane.xlu0 %417  ;;  %v641_v9 = vsub.f32 1.5, %v640_v38  ;;  %v488_v32 = vmul.f32 %v1425_v53, %v1389_v19  ;;  %vm505_vm11 = vmor %vm503_vm8, %vm504_vm9 }
 0x134   :  { %v576_v8 = vsel %vm575_vm2, %v1378_v49, %v572_v62  ;;  %v499_v7 = vmul.f32 %v1414_v47, %v498_v1  ;;  %v1443_v16 = vpop.eup %937  ;;  %941 = vrsqrt.f32 %v1423_v24  ;;  %vm494_vm10 = vweird.f32 %v1425_v53 }
 0x135   :  { %v788_v34 = vmul.f32 %v576_v8, %v1218_v35  ;;  %v566_v17 = vsel %vm565_vm5, %v1381_v48, %v562_v25  ;;  %v642_v51 = vmul.f32 %v1398_v2, %v641_v9  ;;  %v489_v21 = vmul.f32 %v1425_v53, %v488_v32  ;;  %vm495_vm14 = vmor %vm493_vm12, %vm494_vm10 }
 0x136   :  { %v787_v49 = vmul.f32 %v566_v17, %v1225_v45  ;;  %v500_v20 = vmul.f32 0.5, %v499_v7  ;;  %v728_v35 = vmul.f32 %v1443_v16, %v1394_v0  ;;  %943 = vrsqrt.f32 %v1435_v6 }
 0x137   :  { %820 = vst [vmem:[#allocation2 + $0x58] sm:$0xff] %v788_v34  ;;  %v646_v10 = vsel %vm645_vm7, %v1398_v2, %v642_v51  ;;  %v490_v48 = vmul.f32 0.5, %v489_v21  ;;  %vm734_vm15 = vweird.f32 %v1443_v16  ;;  %vm663_vm0 = vweird.f32 %v1421_v3 }
 0x138   :  { %819 = vst [vmem:[#allocation2 + $0x50] sm:$0xff] %v787_v49  ;;  %v501_v45 = vsub.f32 1.5, %v500_v20  ;;  %v795_v57 = vmul.f32 %v646_v10, %v1222_v40  ;;  %v729_v23 = vmul.f32 %v1443_v16, %v728_v35  ;;  %vm735_vm1 = vmor %vm733_vm13, %vm734_vm15  ;;  %vm653_vm5 = vweird.f32 %v1423_v24 }
 0x139   :  { %v1460_v56 = vpop.eup %939  ;;  %v491_v39 = vsub.f32 1.5, %v490_v48  ;;  %v1470_v2 = vpop.xlane.xlu1 %449  ;;  %vm583_vm8 = vweird.f32 %v1435_v6 }
 0x13a   :  { %v502_v37 = vmul.f32 %v1414_v47, %v501_v45  ;;  %v658_v42 = vmul.f32 %v1460_v56, %v1421_v3  ;;  %v1468_v46 = vpop.xlane.xlu2 %403  ;;  %v1472_v22 = vpop.eup %941  ;;  %827 = vst [vmem:[#allocation2 + $0x90] sm:$0xff] %v795_v57  ;;  %v730_v40 = vmul.f32 0.5, %v729_v23  ;;  %vm664_vm2 = vweird.f32 %v1460_v56 }
 0x13b   :  { %945 = vrsqrt.f32 %v1468_v46  ;;  %v1479_v44 = vpop.xlane.xlu0 %435  ;;  %v492_v43 = vmul.f32 %v1425_v53, %v491_v39  ;;  %v648_v18 = vmul.f32 %v1472_v22, %v1423_v24  ;;  %vm654_vm3 = vweird.f32 %v1472_v22  ;;  %vm665_vm4 = vmor %vm663_vm0, %vm664_vm2 }
 0x13c   :  { %v506_v27 = vsel %vm505_vm11, %v1414_v47, %v502_v37  ;;  %v659_v61 = vmul.f32 %v1460_v56, %v658_v42  ;;  %v1486_v59 = vpop.eup %943  ;;  %v731_v63 = vsub.f32 1.5, %v730_v40  ;;  %947 = vrsqrt.f32 %v1470_v2  ;;  %vm655_vm7 = vmor %vm653_vm5, %vm654_vm3 }
 0x13d   :  { %v781_v19 = vmul.f32 %v506_v27, %v1234_v54  ;;  %v496_v47 = vsel %vm495_vm14, %v1425_v53, %v492_v43  ;;  %v649_v14 = vmul.f32 %v1472_v22, %v648_v18  ;;  %v578_v62 = vmul.f32 %v1486_v59, %v1435_v6 }
 0x13e   :  { %v660_v41 = vmul.f32 0.5, %v659_v61  ;;  %v780_v38 = vmul.f32 %v496_v47, %v1240_v60  ;;  %v732_v54 = vmul.f32 %v1443_v16, %v731_v63  ;;  %949 = vrsqrt.f32 %v1479_v44 }
 0x13f   :  { %813 = vst [vmem:[#allocation2 + $0x20] sm:$0xff] %v781_v19  ;;  %v650_v53 = vmul.f32 0.5, %v649_v14  ;;  %v579_v25 = vmul.f32 %v1486_v59, %v578_v62  ;;  %vm584_vm6 = vweird.f32 %v1486_v59  ;;  %vm513_vm10 = vweird.f32 %v1468_v46 }
 0x140   :  { %v661_v1 = vsub.f32 1.5, %v660_v41  ;;  %812 = vst [vmem:[#allocation2 + $0x18] sm:$0xff] %v780_v38  ;;  %v736_v60 = vsel %vm735_vm1, %v1443_v16, %v732_v54  ;;  %vm585_vm9 = vmor %vm583_vm8, %vm584_vm6  ;;  %vm743_vm13 = vweird.f32 %v1470_v2  ;;  %vm673_vm1 = vweird.f32 %v1479_v44 }
 0x141   :  { %v1505_v8 = vpop.eup %945  ;;  %v804_v9 = vmul.f32 %v736_v60, %v1237_v58  ;;  %v651_v32 = vsub.f32 1.5, %v650_v53  ;;  %v580_v0 = vmul.f32 0.5, %v579_v25  ;;  %v1513_v17 = vpop.xlane.xlu1 %419 }
 0x142   :  { %v662_v7 = vmul.f32 %v1460_v56, %v661_v1  ;;  %v1511_v34 = vpop.xlane.xlu2 %421  ;;  %v1515_v49 = vpop.eup %947  ;;  %v508_v58 = vmul.f32 %v1505_v8, %v1468_v46  ;;  %vm514_vm11 = vweird.f32 %v1505_v8  ;;  %vm593_vm5 = vweird.f32 %v1513_v17 }
 0x143   :  { %951 = vrsqrt.f32 %v1511_v34  ;;  %v1524_v16 = vpop.xlane.xlu0 %405  ;;  %836 = vst [vmem:[#allocation2 + $0xd8] sm:$0xff] %v804_v9  ;;  %v652_v20 = vmul.f32 %v1472_v22, %v651_v32  ;;  %v581_v21 = vsub.f32 1.5, %v580_v0  ;;  %v738_v3 = vmul.f32 %v1515_v49, %v1470_v2  ;;  %vm515_vm15 = vmor %vm513_vm10, %vm514_vm11 }
 0x144   :  { %v666_v51 = vsel %vm665_vm4, %v1460_v56, %v662_v7  ;;  %v1530_v35 = vpop.eup %949  ;;  %v509_v10 = vmul.f32 %v1505_v8, %v508_v58  ;;  %953 = vrsqrt.f32 %v1513_v17  ;;  %vm744_vm12 = vweird.f32 %v1515_v49 }
 0x145   :  { %v797_v24 = vmul.f32 %v666_v51, %v1249_v11  ;;  %v656_v45 = vsel %vm655_vm7, %v1472_v22, %v652_v20  ;;  %v582_v48 = vmul.f32 %v1486_v59, %v581_v21  ;;  %v739_v56 = vmul.f32 %v1515_v49, %v738_v3  ;;  %vm745_vm0 = vmor %vm743_vm13, %vm744_vm12 }
 0x146   :  { %v668_v57 = vmul.f32 %v1530_v35, %v1479_v44  ;;  %v796_v11 = vmul.f32 %v656_v45, %v1255_v15  ;;  %v510_v6 = vmul.f32 0.5, %v509_v10  ;;  %955 = vrsqrt.f32 %v1524_v16 }
 0x147   :  { %829 = vst [vmem:[#allocation2 + $0xa0] sm:$0xff] %v797_v24  ;;  %v586_v23 = vsel %vm585_vm9, %v1486_v59, %v582_v48  ;;  %v740_v37 = vmul.f32 0.5, %v739_v56  ;;  %vm674_vm14 = vweird.f32 %v1530_v35  ;;  %vm603_vm3 = vweird.f32 %v1511_v34 }
 0x148   :  { %v669_v39 = vmul.f32 %v1530_v35, %v668_v57  ;;  %828 = vst [vmem:[#allocation2 + $0x98] sm:$0xff] %v796_v11  ;;  %v789_v22 = vmul.f32 %v586_v23, %v1252_v13  ;;  %v511_v40 = vsub.f32 1.5, %v510_v6  ;;  %vm675_vm2 = vmor %vm673_vm1, %vm674_vm14  ;;  %vm523_vm10 = vweird.f32 %v1524_v16 }
 0x149   :  { %v1549_v42 = vpop.eup %951  ;;  %v741_v15 = vsub.f32 1.5, %v740_v37  ;;  %v1559_v18 = vpop.xlane.xlu1 %437 }
 0x14a   :  { %v670_v27 = vmul.f32 0.5, %v669_v39  ;;  %v598_v43 = vmul.f32 %v1549_v42, %v1511_v34  ;;  %v1557_v61 = vpop.xlane.xlu2 %439  ;;  %v1561_v59 = vpop.eup %953  ;;  %821 = vst [vmem:[#allocation2 + $0x60] sm:$0xff] %v789_v22  ;;  %v512_v13 = vmul.f32 %v1505_v8, %v511_v40  ;;  %vm604_vm4 = vweird.f32 %v1549_v42 }
 0x14b   :  { %957 = vrsqrt.f32 %v1557_v61  ;;  %v1567_v19 = vpop.xlane.xlu0 %423  ;;  %v742_v63 = vmul.f32 %v1515_v49, %v741_v15  ;;  %v588_v14 = vmul.f32 %v1561_v59, %v1513_v17  ;;  %vm605_vm6 = vmor %vm603_vm3, %vm604_vm4  ;;  %vm594_vm7 = vweird.f32 %v1561_v59 }
 0x14c   :  { %v671_v47 = vsub.f32 1.5, %v670_v27  ;;  %v599_v41 = vmul.f32 %v1549_v42, %v598_v43  ;;  %v516_v62 = vsel %vm515_vm15, %v1505_v8, %v512_v13  ;;  %959 = vrsqrt.f32 %v1559_v18  ;;  %v1580_v2 = vpop.eup %955  ;;  %vm595_vm9 = vmor %vm593_vm5, %vm594_vm7 }
 0x14d   :  { %v782_v46 = vmul.f32 %v516_v62, %v1264_v29  ;;  %v746_v38 = vsel %vm745_vm0, %v1515_v49, %v742_v63  ;;  %v589_v44 = vmul.f32 %v1561_v59, %v588_v14  ;;  %v518_v25 = vmul.f32 %v1580_v2, %v1524_v16 }
 0x14e   :  { %v672_v54 = vmul.f32 %v1530_v35, %v671_v47  ;;  %v600_v1 = vmul.f32 0.5, %v599_v41  ;;  %v805_v53 = vmul.f32 %v746_v38, %v1270_v33  ;;  %961 = vrsqrt.f32 %v1567_v19 }
 0x14f   :  { %814 = vst [vmem:[#allocation2 + $0x28] sm:$0xff] %v782_v46  ;;  %v590_v9 = vmul.f32 0.5, %v589_v44  ;;  %v519_v7 = vmul.f32 %v1580_v2, %v518_v25  ;;  %vm524_vm8 = vweird.f32 %v1580_v2  ;;  %vm693_vm11 = vweird.f32 %v1557_v61 }
 0x150   :  { %v676_v29 = vsel %vm675_vm2, %v1530_v35, %v672_v54  ;;  %v601_v8 = vsub.f32 1.5, %v600_v1  ;;  %837 = vst [vmem:[#allocation2 + $0xe0] sm:$0xff] %v805_v53  ;;  %vm525_vm12 = vmor %vm523_vm10, %vm524_vm8  ;;  %vm683_vm0 = vweird.f32 %v1559_v18  ;;  %vm613_vm3 = vweird.f32 %v1567_v19 }
 0x151   :  { %v1595_v60 = vpop.eup %957  ;;  %v798_v33 = vmul.f32 %v676_v29, %v1267_v31  ;;  %v1605_v58 = vpop.xlane.xlu1 %407  ;;  %v591_v31 = vsub.f32 1.5, %v590_v9  ;;  %v520_v20 = vmul.f32 0.5, %v519_v7 }
 0x152   :  { %v602_v32 = vmul.f32 %v1549_v42, %v601_v8  ;;  %v688_v0 = vmul.f32 %v1595_v60, %v1557_v61  ;;  %v1603_v49 = vpop.xlane.xlu2 %451  ;;  %v1607_v51 = vpop.eup %959  ;;  %vm694_vm13 = vweird.f32 %v1595_v60  ;;  %vm533_vm10 = vweird.f32 %v1605_v58 }
 0x153   :  { %830 = vst [vmem:[#allocation2 + $0xa8] sm:$0xff] %v798_v33  ;;  %963 = vrsqrt.f32 %v1603_v49  ;;  %v1613_v21 = vpop.xlane.xlu0 %453  ;;  %v678_v24 = vmul.f32 %v1607_v51, %v1559_v18  ;;  %v592_v10 = vmul.f32 %v1561_v59, %v591_v31  ;;  %v521_v45 = vsub.f32 1.5, %v520_v20  ;;  %vm695_vm15 = vmor %vm693_vm11, %vm694_vm13 }
 0x154   :  { %v606_v3 = vsel %vm605_vm6, %v1549_v42, %v602_v32  ;;  %v689_v35 = vmul.f32 %v1595_v60, %v688_v0  ;;  %965 = vrsqrt.f32 %v1605_v58  ;;  %v962_v48 = vpop.eup %961  ;;  %vm684_vm14 = vweird.f32 %v1607_v51 }
 0x155   :  { %v791_v34 = vmul.f32 %v606_v3, %v1279_v50  ;;  %v679_v57 = vmul.f32 %v1607_v51, %v678_v24  ;;  %967 = vrsqrt.f32 %v1613_v21  ;;  %v596_v11 = vsel %vm595_vm9, %v1561_v59, %v592_v10  ;;  %vm685_vm1 = vmor %vm683_vm0, %vm684_vm14 }
 0x156   :  { %v690_v56 = vmul.f32 0.5, %v689_v35  ;;  %v522_v50 = vmul.f32 %v1580_v2, %v521_v45  ;;  %v608_v6 = vmul.f32 %v962_v48, %v1567_v19  ;;  %v790_v23 = vmul.f32 %v596_v11, %v1285_v55 }
 0x157   :  { %823 = vst [vmem:[#allocation2 + $0x70] sm:$0xff] %v791_v34  ;;  %v680_v16 = vmul.f32 0.5, %v679_v57  ;;  %vm614_vm2 = vweird.f32 %v962_v48  ;;  %vm753_vm6 = vweird.f32 %v1603_v49 }
 0x158   :  { %v691_v17 = vsub.f32 1.5, %v690_v56  ;;  %v526_v39 = vsel %vm525_vm12, %v1580_v2, %v522_v50  ;;  %v609_v42 = vmul.f32 %v962_v48, %v608_v6  ;;  %822 = vst [vmem:[#allocation2 + $0x68] sm:$0xff] %v790_v23  ;;  %vm615_vm4 = vmor %vm613_vm3, %vm614_vm2  ;;  %vm763_vm12 = vweird.f32 %v1613_v21 }
 0x159   :  { %v964_v37 = vpop.eup %963  ;;  %v783_v22 = vmul.f32 %v526_v39, %v1282_v52  ;;  %v681_v15 = vsub.f32 1.5, %v680_v16  ;;  %v1641_v27 = vpop.xlane.xlu1 %455 }
 0x15a   :  { %v692_v40 = vmul.f32 %v1595_v60, %v691_v17  ;;  %v748_v55 = vmul.f32 %v964_v37, %v1603_v49  ;;  %v966_v43 = vpop.eup %965  ;;  %v610_v59 = vmul.f32 0.5, %v609_v42  ;;  %969 = vrsqrt.f32 %v1641_v27 }
 0x15b   :  { %v968_v13 = vpop.eup %967  ;;  %815 = vst [vmem:[#allocation2 + $0x30] sm:$0xff] %v783_v22  ;;  %v682_v63 = vmul.f32 %v1607_v51, %v681_v15  ;;  %v528_v41 = vmul.f32 %v966_v43, %v1605_v58  ;;  %vm754_vm5 = vweird.f32 %v964_v37  ;;  %vm534_vm7 = vweird.f32 %v966_v43 }
 0x15c   :  { %v696_v52 = vsel %vm695_vm15, %v1595_v60, %v692_v40  ;;  %v749_v47 = vmul.f32 %v964_v37, %v748_v55  ;;  %v611_v61 = vsub.f32 1.5, %v610_v59  ;;  %v758_v18 = vmul.f32 %v968_v13, %v1613_v21  ;;  %vm755_vm8 = vmor %vm753_vm6, %vm754_vm5 }
 0x15d   :  { %v800_v14 = vmul.f32 %v696_v52, %v1293_v4  ;;  %v686_v62 = vsel %vm685_vm1, %v1607_v51, %v682_v63  ;;  %v529_v46 = vmul.f32 %v966_v43, %v528_v41  ;;  %vm764_vm9 = vweird.f32 %v968_v13  ;;  %vm535_vm11 = vmor %vm533_vm10, %vm534_vm7 }
 0x15e   :  { %v750_v2 = vmul.f32 0.5, %v749_v47  ;;  %v799_v38 = vmul.f32 %v686_v62, %v1299_v12  ;;  %v612_v54 = vmul.f32 %v962_v48, %v611_v61  ;;  %v759_v1 = vmul.f32 %v968_v13, %v758_v18  ;;  %vm765_vm13 = vmor %vm763_vm12, %vm764_vm9 }
 0x15f   :  { %832 = vst [vmem:[#allocation2 + $0xb8] sm:$0xff] %v800_v14  ;;  %v530_v53 = vmul.f32 0.5, %v529_v46  ;;  %vm773_vm15 = vweird.f32 %v1641_v27 }
 0x160   :  { %v751_v4 = vsub.f32 1.5, %v750_v2  ;;  %v970_v44 = vpop.eup %969  ;;  %831 = vst [vmem:[#allocation2 + $0xb0] sm:$0xff] %v799_v38  ;;  %v616_v25 = vsel %vm615_vm4, %v962_v48, %v612_v54  ;;  %v760_v29 = vmul.f32 0.5, %v759_v1 }
 0x161   :  { %v792_v8 = vmul.f32 %v616_v25, %v1295_v5  ;;  %v531_v33 = vsub.f32 1.5, %v530_v53  ;;  %v768_v12 = vmul.f32 %v970_v44, %v1641_v27  ;;  %vm774_vm14 = vweird.f32 %v970_v44 }
 0x162   :  { %v752_v60 = vmul.f32 %v964_v37, %v751_v4  ;;  %v761_v19 = vsub.f32 1.5, %v760_v29  ;;  %vm775_vm0 = vmor %vm773_vm15, %vm774_vm14 }
 0x163   :  { %824 = vst [vmem:[#allocation2 + $0x78] sm:$0xff] %v792_v8  ;;  %v532_v7 = vmul.f32 %v966_v43, %v531_v33  ;;  %v769_v32 = vmul.f32 %v970_v44, %v768_v12 }
 0x164   :  { %v756_v9 = vsel %vm755_vm8, %v964_v37, %v752_v60  ;;  %v762_v49 = vmul.f32 %v968_v13, %v761_v19 }
 0x165   :  { %v806_v0 = vmul.f32 %v756_v9, %v1309_v26  ;;  %v536_v5 = vsel %vm535_vm11, %v966_v43, %v532_v7  ;;  %v770_v51 = vmul.f32 0.5, %v769_v32 }
 0x166   :  { %v784_v31 = vmul.f32 %v536_v5, %v1311_v28  ;;  %v766_v20 = vsel %vm765_vm13, %v968_v13, %v762_v49 }
 0x167   :  { %838 = vst [vmem:[#allocation2 + $0xe8] sm:$0xff] %v806_v0  ;;  %v807_v3 = vmul.f32 %v766_v20, %v1313_v30  ;;  %v771_v35 = vsub.f32 1.5, %v770_v51 }
 0x168   :  { %816 = vst [vmem:[#allocation2 + $0x38] sm:$0xff] %v784_v31 }
 0x169   :  { %839 = vst [vmem:[#allocation2 + $0xf0] sm:$0xff] %v807_v3  ;;  %v772_v26 = vmul.f32 %v970_v44, %v771_v35 }
 0x16b   :  { %v776_v58 = vsel %vm775_vm0, %v970_v44, %v772_v26 }
 0x16c   :  { %v808_v28 = vmul.f32 %v776_v58, %v1321_v36 }
 0x16e   :  { %840 = vst [vmem:[#allocation2 + $0xf8] sm:$0xff] %v808_v28 }
 0x16f   :  { %853 = dma.vmem_to_hbm [thread:$0]  %s846_s2, 4096, %s848_s4, [#allocation3], %s998_s5, %s998_s5, %s999_s6  }
 0x170   :  { %995 = dma.done.wait [#allocation3], 4096  }
 0x171   :  { %996 = vsyncadd [#allocation3], 4294963200 }
 0x172   :  { %858 = vsyncpa [#allocation3], 1 }

</bundles_post_ra>
